<compile_context>
chip_gen: v7x
topology: tpu7x:2x2x1
jax: 0.10.0
libtpu: 0.0.40
codegen_flags: <defaults>
</compile_context>

<pallas_src>
import functools

import jax
import jax.numpy as jnp
from jax.experimental import pallas as pl
from jax.experimental.pallas import tpu as pltpu


def _forward_shift_kernel(x_ref, o_ref, *, width):
    x = x_ref[...]                                   # (TR, LANES) tile in VMEM
    rolled = pltpu.roll(x, shift=1, axis=1)          # XLU lane rotation
    lanes = x.shape[1]
    # (1, LANES) mask broadcast across sublanes: zero every position whose
    # original width-index is 0. This also kills the wrapped-around element
    # the roll brings into each row, so any row-major fold is correct.
    lane = jax.lax.broadcasted_iota(jnp.int32, (1, lanes), 1)
    zero_col = (lane == 0) if width == lanes else ((lane % width) == 0)
    o_ref[...] = jnp.where(zero_col, jnp.zeros((), x.dtype), rolled)


def _sublane_align(itemsize):
    # 8 rows for 32-bit, 16 for 16-bit, 32 for 8-bit packed dtypes.
    return 8 * max(1, 4 // max(1, itemsize))


def _vmem_capacity_bytes():
    try:
        cap = int(getattr(pltpu.get_tpu_info(), "vmem_capacity_bytes", 0))
        if cap > 0:
            return cap
    except Exception:
        pass
    return 64 << 20                                   # conservative: v7x per-TC


def _budgets():
    """(target_bytes_per_buffer, per_buffer_cap, vmem_capacity) — gen aware."""
    cap = _vmem_capacity_bytes()
    if cap <= (64 << 20):
        # v7x-class: 64 MiB physical VMEM/TC, 3.2 TB/s HBM -> bigger tiles,
        # but keep 4 pipelined buffers comfortably under ~48 MiB.
        return 10 << 20, 12 << 20, cap
    # v5e / v6e: 128 MiB physical VMEM.
    return 6 << 20, 16 << 20, cap


def _choose_layout(n, c, h, w, itemsize, per_buffer_cap):
    """Pick a (rows, lanes) view; lanes always contains whole W-rows."""
    align = _sublane_align(itemsize)
    candidates = [
        (n * c * h, w),            # no fold (max rows)
        (n * c, h * w),            # fold H into lanes
        (n, c * h * w),            # fold C and H into lanes
    ]

    def min_block(lanes):          # smallest legal block per buffer
        return align * lanes * itemsize

    # Prefer lane counts that are multiples of 128 (unmasked stores), choosing
    # the smallest such fold (keeps row axis long for tiling / megacore),
    # subject to the minimum legal block fitting the per-buffer VMEM budget.
    dense = [(r, l) for r, l in candidates
             if l % 128 == 0 and min_block(l) <= per_buffer_cap]
    if dense:
        return min(dense, key=lambda rl: rl[1])
    fitting = [(r, l) for r, l in candidates if min_block(l) <= per_buffer_cap]
    if not fitting:
        return candidates[0]       # lanes = W is always the smallest option
    # No 128-multiple reachable: a larger lane width still shrinks tail waste.
    return max(fitting, key=lambda rl: rl[1])


def _pick_row_tile(rows, lanes, itemsize, target_bytes, per_buffer_cap):
    align = _sublane_align(itemsize)
    row_bytes = lanes * itemsize

    def clamp(t):
        return max(align, (t // align) * align)

    tr = clamp(target_bytes // row_bytes)
    tr = min(tr, clamp(per_buffer_cap // row_bytes))
    rows_padded = ((rows + align - 1) // align) * align
    tr = min(tr, rows_padded)

    # Keep >=2 grid steps when possible (both v7x TensorCores get work) and
    # push toward >=8 steps while each buffer stays >= ~2 MiB.
    def steps(t):
        return -(-rows // t)

    while tr > align:
        half = clamp(tr // 2)
        if steps(tr) < 2 or (steps(tr) < 8 and half * row_bytes >= (2 << 20)):
            tr = half
        else:
            break
    return tr


def forward_shift(x, *, donate_input=False):
    """x: (N, C, H, W) -> (N, C, H, W), forward-shifted along W with zero fill."""
    n, c, h, w = x.shape
    itemsize = jnp.dtype(x.dtype).itemsize
    target_bytes, per_buffer_cap, vmem_cap = _budgets()

    rows, lanes = _choose_layout(n, c, h, w, itemsize, per_buffer_cap)
    x2 = x.reshape(rows, lanes)

    tr = _pick_row_tile(rows, lanes, itemsize, target_bytes, per_buffer_cap)
    grid = (pl.cdiv(rows, tr),)

    block_bytes = tr * lanes * itemsize
    # 2 input + 2 output double-buffered blocks, plus headroom; keep below
    # physical VMEM with margin.
    vmem_limit = min(vmem_cap - (8 << 20), 4 * block_bytes + (8 << 20))
    vmem_limit = int(max(vmem_limit, 16 << 20))

    call_kwargs = {}
    if donate_input:
        # Does not reduce HBM traffic (still read+write), but drops one
        # full-tensor allocation when the caller no longer needs x.
        call_kwargs["input_output_aliases"] = {0: 0}

    out2 = pl.pallas_call(
        functools.partial(_forward_shift_kernel, width=w),
        out_shape=jax.ShapeDtypeStruct((rows, lanes), x.dtype),
        grid=grid,
        in_specs=[pl.BlockSpec((tr, lanes), lambda i: (i, 0))],
        out_specs=pl.BlockSpec((tr, lanes), lambda i: (i, 0)),
        compiler_params=pltpu.CompilerParams(
            dimension_semantics=("parallel",),
            vmem_limit_bytes=vmem_limit),
        cost_estimate=pl.CostEstimate(
            flops=0,
            transcendentals=0,
            bytes_accessed=2 * rows * lanes * itemsize),
        **call_kwargs,
    )(x2)
    return out2.reshape(n, c, h, w)


def _reference(x):
    # Pure-JAX reference of the PyTorch forward (pad-left, roll, drop first col).
    return jnp.concatenate([jnp.zeros_like(x[..., :1]), x[..., :-1]], axis=-1)


if __name__ == "__main__":
    # ForwardShift has no learnable parameters (in_channels is only stored).
    key = jax.random.PRNGKey(0)

    # Folded-lane path (W % 128 != 0 -> lanes = H*W = 256).
    x = jax.random.normal(key, (2, 4, 16, 16), dtype=jnp.float32)
    y = forward_shift(x)
    jax.block_until_ready(y)
    assert y.shape == x.shape and y.dtype == x.dtype
    assert jnp.allclose(y, _reference(x)), "ForwardShift mismatch (folded path)"

    # Lane-dense path (W % 128 == 0 -> lanes = W, multi-step grid).
    x2 = jax.random.normal(jax.random.PRNGKey(1), (1, 2, 8, 128), dtype=jnp.float32)
    y2 = forward_shift(x2)
    jax.block_until_ready(y2)
    assert jnp.allclose(y2, _reference(x2)), "ForwardShift mismatch (dense path)"

    print("KERNEL_OK")
</pallas_src>

<mosaic_0001>
module attributes {stable_mosaic.version = 11 : i64} {
  func.func @_forward_shift_kernel(%arg0: i32, %arg1: memref<8x256xf32, #tpu.memory_space<vmem>>, %arg2: memref<8x256xf32, #tpu.memory_space<vmem>>) attributes {dimension_semantics = [#tpu.dimension_semantics<parallel>], iteration_bounds = array<i64: 1>, scalar_prefetch = 0 : i64, scratch_operands = 0 : i64, tpu.core_type = #tpu.core_type<tc>, window_params = [{transform_indices = @transform_0, window_bounds = array<i64: 8, 256>}, {transform_indices = @transform_1, window_bounds = array<i64: 8, 256>}]} {
    %c0 = arith.constant 0 : index
    %c0_0 = arith.constant 0 : index
    %0 = vector.load %arg1[%c0, %c0_0] : memref<8x256xf32, #tpu.memory_space<vmem>>, vector<8x256xf32>
    %c1_i32 = arith.constant 1 : i32
    %1 = tpu.dynamic_rotate %0 by %c1_i32 dim 1 : vector<8x256xf32>, i32 -> vector<8x256xf32>
    %2 = tpu.iota {dimensions = array<i32: 1>} : vector<1x256xi32>
    %c16_i32 = arith.constant 16 : i32
    %c0_i32 = arith.constant 0 : i32
    %3 = arith.cmpi eq, %c16_i32, %c0_i32 : i32
    %c1_i32_1 = arith.constant 1 : i32
    %4 = arith.select %3, %c1_i32_1, %c16_i32 : i32
    %5 = vector.broadcast %4 : i32 to vector<1x256xi32>
    %6 = arith.remsi %2, %5 : vector<1x256xi32>
    %c0_i32_2 = arith.constant 0 : i32
    %7 = vector.broadcast %c0_i32_2 : i32 to vector<1x256xi32>
    %8 = arith.cmpi ne, %6, %7 : vector<1x256xi32>
    %c0_i32_3 = arith.constant 0 : i32
    %9 = vector.broadcast %c0_i32_3 : i32 to vector<1x256xi32>
    %10 = arith.cmpi slt, %6, %9 : vector<1x256xi32>
    %c0_i32_4 = arith.constant 0 : i32
    %11 = arith.cmpi slt, %4, %c0_i32_4 : i32
    %12 = vector.broadcast %11 : i1 to vector<1x256xi1>
    %13 = vector.broadcast %12 : vector<1x256xi1> to vector<1x256xi1>
    %14 = arith.xori %10, %13 : vector<1x256xi1>
    %15 = arith.andi %14, %8 : vector<1x256xi1>
    %16 = vector.broadcast %4 : i32 to vector<1x256xi32>
    %17 = arith.addi %6, %16 : vector<1x256xi32>
    %18 = arith.select %15, %17, %6 : vector<1x256xi1>, vector<1x256xi32>
    %c0_i32_5 = arith.constant 0 : i32
    %19 = vector.broadcast %c0_i32_5 : i32 to vector<1x256xi32>
    %20 = arith.cmpi eq, %18, %19 : vector<1x256xi32>
    %cst = arith.constant 0.000000e+00 : f32
    %21 = vector.shape_cast %20 : vector<1x256xi1> to vector<1x256xi1>
    %22 = vector.broadcast %21 : vector<1x256xi1> to vector<8x256xi1>
    %23 = vector.broadcast %cst : f32 to vector<8x256xf32>
    %24 = arith.select %22, %23, %1 : vector<8x256xi1>, vector<8x256xf32>
    %c0_6 = arith.constant 0 : index
    %c0_7 = arith.constant 0 : index
    %25 = vector.load %arg2[%c0_6, %c0_7] : memref<8x256xf32, #tpu.memory_space<vmem>>, vector<8x256xf32>
    tpu.vector_store %arg2[%c0_6, %c0_7], %24 {strides = array<i32>} : memref<8x256xf32, #tpu.memory_space<vmem>>, vector<8x256xf32>,
    return
  }
  func.func @transform_0(%arg0: i32) -> (i32, i32) {
    %c0_i32 = arith.constant 0 : i32
    %c0_i32_0 = arith.constant 0 : i32
    return %arg0, %c0_i32 : i32, i32
  }
  func.func @transform_1(%arg0: i32) -> (i32, i32) {
    %c0_i32 = arith.constant 0 : i32
    %c0_i32_0 = arith.constant 0 : i32
    return %arg0, %c0_i32 : i32, i32
  }
}

</mosaic_0001>

<bundles_post_ra>
// kernel: tpu_custom_call.1
= control target key start
LH: loop header
LB: loop body
LE: loop exit
PB: predicated region body
PF: predicated region fallthrough
CT: control target
= control target key end

     0   :  { %6 = vsyncpa [#allocation3], 0  ;;  %s170_s0 = inlined_call_operand.hbm [shape: f32[8,256], index: 0, kind: input, shape index: {}]   ;;  %s171_s1 = inlined_call_operand.hbm [shape: f32[8,256], index: 1, kind: output, shape index: {}]  }
   0x1   :  { %7 = vsyncpa [#allocation4], 0  ;;  %s133_s6 = smov [#allocation2]   ;;  %s85_s10 = scalar_lea.hbm %s170_s0, 256 }
   0x2   :  { %s14_s7 = sshll.u32 %s133_s6, 4  ;;  %p86_p0 = scmp.ne.s32.totalorder %s170_s0, %s85_s10  ;;  %s15_s7 = int_to_ptr.vmem [resolvable:$true] %s14_s7 }
   0x3   :  { %p89_p1 = scmp.lt.u32.totalorder %s85_s10, %s170_s0 }
   0x5   :  { %p91_p2 = pnand %p89_p1, %p86_p0 }
   0x7   :  { %94 = shalt.err (!%p91_p2)
}
   0x8   :  { %s95_s15 = scalar_lea.vmem %s15_s7, 256  ;;  %p100_p4 = scmp.lt.s32.totalorder %s15_s7, %s15_s7 }
   0x9   :  { %p96_p3 = scmp.ne.s32.totalorder %s15_s7, %s95_s15  ;;  %p101_p5 = scmp.lt.s32.totalorder %s95_s15, %s95_s15 }
   0xb   :  { %p102_p6 = por %p101_p5, %p100_p4 }
   0xd   :  { %p103_p7 = pnand %p102_p6, %p96_p3 }
   0xf   :  { %106 = shalt.err (!%p103_p7)
}
  0x10   :  { %17 = dma.hbm_to_vmem [thread:$0]  %s170_s0, 256, %s15_s7, [#allocation3]  }
  0x11   :  { %129 = dma.done.wait [#allocation3], 256  }
  0x12   :  { %130 = vsyncadd [#allocation3], 4294967040  ;;  %v21_v0 = vld [vmem:[#allocation2] sm:$0xff]  ;;  %s134_s18 = smov 1   ;;  %v22_v1 = vld [vmem:[#allocation2 + $0x8] sm:$0xff]  ;;  %v27_v2 = vlaneseq  ;;  %s135_s19 = smov [#allocation5]  }
  0x13   :  { %23 = vrot.lane.b32.xlu0 %v21_v0, %s134_s18  ;;  %s73_s20 = sshll.u32 %s135_s19, 4  ;;  %s74_s20 = int_to_ptr.vmem [resolvable:$true] %s73_s20 }
  0x14   :  { %v28_v3 = vand.u32 127, %v27_v2  ;;  %s107_s0 = scalar_lea.vmem %s74_s20, 256  ;;  %p112_p9 = scmp.lt.s32.totalorder %s74_s20, %s74_s20 }
  0x15   :  { %p108_p8 = scmp.ne.s32.totalorder %s74_s20, %s107_s0  ;;  %p113_p10 = scmp.lt.s32.totalorder %s107_s0, %s107_s0 }
  0x16   :  { %v32_v4 = vadd.s32 128, %v28_v3  ;;  %v37_v5 = vand.u32 15, %v28_v3  ;;  %vm29_vm0 = vcmp.lt.s32.totalorder %v28_v3, 1 }
  0x17   :  { %25 = vrot.lane.b32.xlu0 %v22_v1, %s134_s18  ;;  %p114_p11 = por %p113_p10, %p112_p9 }
  0x18   :  { %v44_v6 = vand.u32 15, %v32_v4  ;;  %vm57_vm1 = vcmp.eq.s32.totalorder %v37_v5, 0 }
  0x19   :  { %p115_p12 = pnand %p114_p11, %p108_p8 }
  0x1a   :  { %vm58_vm2 = vcmp.eq.s32.totalorder %v44_v6, 0 }
  0x85   :  { %v24_v7 = vpop.permute.xlu0 %23 }
  0x89   :  { %v26_v8 = vpop.permute.xlu0 %25 }
  0x8a   :  { %v30_v9 = vsel %vm29_vm0, %v24_v7, %v26_v8  ;;  %v31_v10 = vsel %vm29_vm0, %v26_v8, %v24_v7 }
  0x8b   :  { %v63_v11 = vsel %vm57_vm1, 0.0, %v31_v10  ;;  %v64_v12 = vsel %vm58_vm2, 0.0, %v30_v9 }
  0x8c   :  { %65 = vst [vmem:[#allocation5] sm:$0xff] %v63_v11  ;;  %66 = vst [vmem:[#allocation5 + $0x8] sm:$0xff] %v64_v12 }
  0x8d   :  { %118 = shalt.err (!%p115_p12)
}
  0x8e   :  { %s119_s23 = scalar_lea.hbm %s171_s1, 256 }
  0x8f   :  { %p120_p13 = scmp.ne.s32.totalorder %s171_s1, %s119_s23  ;;  %p123_p0 = scmp.lt.u32.totalorder %s119_s23, %s171_s1 }
  0x91   :  { %p125_p1 = pnand %p123_p0, %p120_p13 }
  0x93   :  { %128 = shalt.err (!%p125_p1)
}
  0x94   :  { %76 = dma.vmem_to_hbm [thread:$0]  %s74_s20, 256, %s171_s1, [#allocation4]  }
  0x95   :  { %131 = dma.done.wait [#allocation4], 256  }
  0x96   :  { %132 = vsyncadd [#allocation4], 4294967040 }
  0x97   :  { %80 = vsyncpa [#allocation3], 1 }
  0x98   :  { %81 = vsyncpa [#allocation4], 1 }

</bundles_post_ra>
